<compile_context>
chip_gen: v7x
topology: tpu7x:2x2x1
jax: 0.10.0
libtpu: 0.0.40
codegen_flags: <defaults>
</compile_context>

<pallas_src>
import functools
import math

import jax
import jax.numpy as jnp
from jax.experimental import pallas as pl
from jax.experimental.pallas import tpu as pltpu


def _nodevec_kernel(e1_ref, e2_ref, w1_ref, b1_ref, w2_ref, b2_ref,
                    n1_ref, n2_ref, *, alpha):
    # Fused Linear + tanh(alpha * .) for both node embeddings; one invocation,
    # whole arrays resident in VMEM (shapes are (N, dim) / (dim, dim)).
    n1 = jnp.tanh(alpha * (jnp.dot(e1_ref[...], w1_ref[...],
                                   preferred_element_type=jnp.float32)
                           + b1_ref[...]))
    n2 = jnp.tanh(alpha * (jnp.dot(e2_ref[...], w2_ref[...],
                                   preferred_element_type=jnp.float32)
                           + b2_ref[...]))
    n1_ref[...] = n1.astype(n1_ref.dtype)
    n2_ref[...] = n2.astype(n2_ref.dtype)


def _adj_kernel(n1b_ref, n2b_ref, n1f_ref, n2f_ref, adj_ref, *, alpha):
    # One row-block of the antisymmetric adjacency:
    #   a_blk   = n1_blk @ n2_full.T - n2_blk @ n1_full.T      (bn, N)
    #   adj_blk = relu(tanh(alpha * a_blk))
    dims = (((1,), (1,)), ((), ()))          # contract feature dim == A @ B.T
    t1 = jax.lax.dot_general(n1b_ref[...], n2f_ref[...], dims,
                             preferred_element_type=jnp.float32)
    t2 = jax.lax.dot_general(n2b_ref[...], n1f_ref[...], dims,
                             preferred_element_type=jnp.float32)
    adj_ref[...] = jnp.maximum(jnp.tanh(alpha * (t1 - t2)), 0.0).astype(adj_ref.dtype)


def _pick_row_block(n):
    # Largest multiple-of-8 divisor of n that still yields >= 2 grid steps
    # (keeps v7x megacore busy); otherwise fall back to one full-size block.
    for cand in (1024, 512, 256, 128, 64, 32, 16, 8):
        if n % cand == 0 and n // cand >= 2:
            return cand
    return n


def dense_adjacency(e1, e2, w1, b1, w2, b2, alpha):
    """adj0 = relu(tanh(alpha*(n1 @ n2.T - n2 @ n1.T))), n_i = tanh(alpha*lin_i(e_i))."""
    N, dim = e1.shape

    # Kernel 1: both nodevec transforms fused, single step, whole-array blocks.
    n1, n2 = pl.pallas_call(
        functools.partial(_nodevec_kernel, alpha=alpha),
        out_shape=(jax.ShapeDtypeStruct((N, dim), jnp.float32),
                   jax.ShapeDtypeStruct((N, dim), jnp.float32)),
    )(e1, e2, w1, b1, w2, b2)

    # Kernel 2: adjacency blocked over output rows; full n1/n2 stay resident.
    bn = _pick_row_block(N)
    adj0 = pl.pallas_call(
        functools.partial(_adj_kernel, alpha=alpha),
        out_shape=jax.ShapeDtypeStruct((N, N), jnp.float32),
        grid_spec=pltpu.PrefetchScalarGridSpec(
            num_scalar_prefetch=0,
            grid=(N // bn,),
            in_specs=[
                pl.BlockSpec((bn, dim), lambda i: (i, 0)),   # n1 row block
                pl.BlockSpec((bn, dim), lambda i: (i, 0)),   # n2 row block
                pl.BlockSpec((N, dim), lambda i: (0, 0)),    # n1 full (resident)
                pl.BlockSpec((N, dim), lambda i: (0, 0)),    # n2 full (resident)
            ],
            out_specs=pl.BlockSpec((bn, N), lambda i: (i, 0)),  # lane-dense rows
        ),
        compiler_params=pltpu.CompilerParams(
            dimension_semantics=("parallel",),
        ),
    )(n1, n2, n1, n2)
    return adj0


def graph_constructor_forward(idx, emb1, emb2, w1, b1, w2, b2, k, alpha, noise_key):
    # Embedding lookup (gather) done in the wrapper.
    e1 = jnp.take(emb1, idx, axis=0).astype(jnp.float32)
    e2 = jnp.take(emb2, idx, axis=0).astype(jnp.float32)
    N = e1.shape[0]

    adj0 = dense_adjacency(e1, e2, w1, b1, w2, b2, alpha)

    # TODO(synk): top-k + scatter_ mask (and the 0.01*rand tie-break noise) have
    # no clean Pallas/Mosaic lowering; done in plain JAX on the (N, N) adjacency.
    perturbed = adj0 + jax.random.uniform(noise_key, (N, N), dtype=adj0.dtype) * 0.01
    _, t1 = jax.lax.top_k(perturbed, k)                               # (N, k)
    mask = jnp.zeros((N, N), adj0.dtype).at[jnp.arange(N)[:, None], t1].set(1.0)
    adj = adj0 * mask + jnp.eye(N, dtype=adj0.dtype)

    # TODO(synk): dgl.graph construction has no JAX equivalent; return the edge
    # index lists (u, v) + edge weights adj[u, v] instead (same ordering as the
    # PyTorch loops: k top-k edges then the self loop, per node).
    rows = jnp.arange(N, dtype=t1.dtype)
    u = jnp.repeat(rows, k + 1)
    v = jnp.concatenate([t1, rows[:, None]], axis=1).reshape(-1)
    w_edge = adj[u, v]
    return adj, adj0, (u, v, w_edge), (v, u, w_edge)


def _reference_dense(e1, e2, w1, b1, w2, b2, alpha):
    hp = jax.lax.Precision.HIGHEST
    n1 = jnp.tanh(alpha * (jnp.dot(e1, w1, precision=hp) + b1))
    n2 = jnp.tanh(alpha * (jnp.dot(e2, w2, precision=hp) + b2))
    a = jnp.dot(n1, n2.T, precision=hp) - jnp.dot(n2, n1.T, precision=hp)
    return jnp.maximum(jnp.tanh(alpha * a), 0.0)


if __name__ == "__main__":
    key = jax.random.PRNGKey(0)
    k_e1, k_e2, k_w1, k_b1, k_w2, k_b2, k_noise = jax.random.split(key, 7)

    # Small shapes consistent with graph_constructor: nnodes nodes, dim-wide embeddings.
    nnodes, dim, topk, alpha = 16, 32, 4, 3.0
    scale = 1.0 / math.sqrt(dim)
    emb1 = jax.random.normal(k_e1, (nnodes, dim), jnp.float32) * 0.5
    emb2 = jax.random.normal(k_e2, (nnodes, dim), jnp.float32) * 0.5
    w1 = jax.random.normal(k_w1, (dim, dim), jnp.float32) * scale
    b1 = jax.random.normal(k_b1, (1, dim), jnp.float32) * 0.01
    w2 = jax.random.normal(k_w2, (dim, dim), jnp.float32) * scale
    b2 = jax.random.normal(k_b2, (1, dim), jnp.float32) * 0.01
    idx = jnp.arange(nnodes, dtype=jnp.int32)

    adj, adj0, (u, v, w_edge), (rv, ru, rw) = graph_constructor_forward(
        idx, emb1, emb2, w1, b1, w2, b2, topk, alpha, k_noise)
    adj = jax.block_until_ready(adj)

    # Correctness of the Pallas dense path against a high-precision JAX reference.
    e1 = jnp.take(emb1, idx, axis=0)
    e2 = jnp.take(emb2, idx, axis=0)
    ref = _reference_dense(e1, e2, w1, b1, w2, b2, alpha)
    assert adj0.shape == (nnodes, nnodes)
    assert jnp.allclose(adj0, ref, atol=1e-3, rtol=1e-3)

    # Shape / structure sanity of the masked adjacency and edge lists.
    assert adj.shape == (nnodes, nnodes)
    assert u.shape == (nnodes * (topk + 1),)
    assert v.shape == u.shape == w_edge.shape

    print("KERNEL_OK")
</pallas_src>

<mosaic_0001>
module attributes {stable_mosaic.version = 11 : i64} {
  func.func @_nodevec_kernel(%arg0: memref<16x32xf32, #tpu.memory_space<vmem>>, %arg1: memref<16x32xf32, #tpu.memory_space<vmem>>, %arg2: memref<32x32xf32, #tpu.memory_space<vmem>>, %arg3: memref<1x32xf32, #tpu.memory_space<vmem>>, %arg4: memref<32x32xf32, #tpu.memory_space<vmem>>, %arg5: memref<1x32xf32, #tpu.memory_space<vmem>>, %arg6: memref<16x32xf32, #tpu.memory_space<vmem>>, %arg7: memref<16x32xf32, #tpu.memory_space<vmem>>) attributes {dimension_semantics = [], scalar_prefetch = 0 : i64, scratch_operands = 0 : i64, tpu.core_type = #tpu.core_type<tc>} {
    %c0 = arith.constant 0 : index
    %c0_0 = arith.constant 0 : index
    %0 = vector.load %arg0[%c0, %c0_0] : memref<16x32xf32, #tpu.memory_space<vmem>>, vector<16x32xf32>
    %c0_1 = arith.constant 0 : index
    %c0_2 = arith.constant 0 : index
    %1 = vector.load %arg2[%c0_1, %c0_2] : memref<32x32xf32, #tpu.memory_space<vmem>>, vector<32x32xf32>
    %cst = arith.constant dense<0.000000e+00> : vector<16x32xf32>
    %2 = tpu.matmul %0, %1, %cst {dimension_numbers = #tpu.dot_dimension_numbers<[1], [0], [0], [1], [0, 0, 1, 1], [], []>} : vector<16x32xf32>, vector<32x32xf32>, vector<16x32xf32> -> vector<16x32xf32>
    %c0_3 = arith.constant 0 : index
    %c0_4 = arith.constant 0 : index
    %3 = vector.load %arg3[%c0_3, %c0_4] : memref<1x32xf32, #tpu.memory_space<vmem>>, vector<1x32xf32>
    %4 = vector.broadcast %3 : vector<1x32xf32> to vector<16x32xf32>
    %5 = arith.addf %2, %4 : vector<16x32xf32>
    %cst_5 = arith.constant 3.000000e+00 : f32
    %6 = vector.broadcast %cst_5 : f32 to vector<16x32xf32>
    %7 = arith.mulf %6, %5 : vector<16x32xf32>
    %8 = math.tanh %7 : vector<16x32xf32>
    %c0_6 = arith.constant 0 : index
    %c0_7 = arith.constant 0 : index
    %9 = vector.load %arg1[%c0_6, %c0_7] : memref<16x32xf32, #tpu.memory_space<vmem>>, vector<16x32xf32>
    %c0_8 = arith.constant 0 : index
    %c0_9 = arith.constant 0 : index
    %10 = vector.load %arg4[%c0_8, %c0_9] : memref<32x32xf32, #tpu.memory_space<vmem>>, vector<32x32xf32>
    %cst_10 = arith.constant dense<0.000000e+00> : vector<16x32xf32>
    %11 = tpu.matmul %9, %10, %cst_10 {dimension_numbers = #tpu.dot_dimension_numbers<[1], [0], [0], [1], [0, 0, 1, 1], [], []>} : vector<16x32xf32>, vector<32x32xf32>, vector<16x32xf32> -> vector<16x32xf32>
    %c0_11 = arith.constant 0 : index
    %c0_12 = arith.constant 0 : index
    %12 = vector.load %arg5[%c0_11, %c0_12] : memref<1x32xf32, #tpu.memory_space<vmem>>, vector<1x32xf32>
    %13 = vector.broadcast %12 : vector<1x32xf32> to vector<16x32xf32>
    %14 = arith.addf %11, %13 : vector<16x32xf32>
    %cst_13 = arith.constant 3.000000e+00 : f32
    %15 = vector.broadcast %cst_13 : f32 to vector<16x32xf32>
    %16 = arith.mulf %15, %14 : vector<16x32xf32>
    %17 = math.tanh %16 : vector<16x32xf32>
    %c0_14 = arith.constant 0 : index
    %c0_15 = arith.constant 0 : index
    %18 = vector.load %arg6[%c0_14, %c0_15] : memref<16x32xf32, #tpu.memory_space<vmem>>, vector<16x32xf32>
    tpu.vector_store %arg6[%c0_14, %c0_15], %8 {strides = array<i32>} : memref<16x32xf32, #tpu.memory_space<vmem>>, vector<16x32xf32>,
    %c0_16 = arith.constant 0 : index
    %c0_17 = arith.constant 0 : index
    %19 = vector.load %arg7[%c0_16, %c0_17] : memref<16x32xf32, #tpu.memory_space<vmem>>, vector<16x32xf32>
    tpu.vector_store %arg7[%c0_16, %c0_17], %17 {strides = array<i32>} : memref<16x32xf32, #tpu.memory_space<vmem>>, vector<16x32xf32>,
    return
  }
}

</mosaic_0001>

<bundles_post_ra>
// kernel: tpu_custom_call.1
= control target key start
LH: loop header
LB: loop body
LE: loop exit
PB: predicated region body
PF: predicated region fallthrough
CT: control target
= control target key end

     0   :  { %13 = vsyncpa [#allocation3], 0  ;;  %s705_s0 = inlined_call_operand.hbm [shape: f32[16,32], index: 0, kind: input, shape index: {}]   ;;  %s706_s1 = inlined_call_operand.hbm [shape: f32[16,32], index: 1, kind: input, shape index: {}]   ;;  %s707_s2 = inlined_call_operand.hbm [shape: f32[32,32], index: 2, kind: input, shape index: {}]   ;;  %s708_s3 = inlined_call_operand.vmem [shape: f32[1,32], index: 3, kind: input, shape index: {}]   ;;  %s709_s4 = inlined_call_operand.hbm [shape: f32[32,32], index: 4, kind: input, shape index: {}]   ;;  %s710_s5 = inlined_call_operand.vmem [shape: f32[1,32], index: 5, kind: input, shape index: {}]   ;;  %s711_s6 = inlined_call_operand.hbm [shape: f32[16,32], index: 6, kind: output, shape index: {0}]   ;;  %s712_s7 = inlined_call_operand.hbm [shape: f32[16,32], index: 7, kind: output, shape index: {1}]  }
   0x1   :  { %14 = vsyncpa [#allocation6], 0 }
   0x2   :  { %15 = vsyncpa [#allocation9], 0 }
   0x3   :  { %16 = vsyncpa [#allocation4], 0 }
   0x4   :  { %17 = vsyncpa [#allocation12], 0  ;;  %s532_s24 = smov [#allocation5]   ;;  %s533_s26 = smov [#allocation2]  }
   0x5   :  { %s35_s25 = sshll.u32 %s532_s24, 4  ;;  %s23_s27 = sshll.u32 %s533_s26, 4  ;;  %s36_s25 = int_to_ptr.vmem [resolvable:$true] %s35_s25  ;;  %s580_s27 = int_to_ptr.vmem [resolvable:$true] %s23_s27 }
   0x6   :  { %s390_s30 = scalar_lea.hbm %s706_s1, 256 }
   0x7   :  { %p391_p0 = scmp.ne.s32.totalorder %s706_s1, %s390_s30  ;;  %p394_p1 = scmp.lt.u32.totalorder %s390_s30, %s706_s1 }
   0x9   :  { %p396_p2 = pnand %p394_p1, %p391_p0 }
   0xb   :  { %399 = shalt.err (!%p396_p2)
}
   0xc   :  { %s400_s12 = scalar_lea.vmem %s36_s25, 256  ;;  %p405_p4 = scmp.lt.s32.totalorder %s36_s25, %s36_s25 }
   0xd   :  { %p401_p3 = scmp.ne.s32.totalorder %s36_s25, %s400_s12  ;;  %p406_p5 = scmp.lt.s32.totalorder %s400_s12, %s400_s12 }
   0xf   :  { %p407_p6 = por %p406_p5, %p405_p4 }
  0x11   :  { %p408_p7 = pnand %p407_p6, %p401_p3 }
  0x13   :  { %411 = shalt.err (!%p408_p7)
}
  0x14   :  { %s534_s13 = smov 128   ;;  %s535_s14 = smov 8  }
  0x15   :  { %41 = dma.hbm_to_vmem [thread:$0]  %s706_s1, 256, %s36_s25, [#allocation6], %s534_s13, %s534_s13, %s535_s14  }
  0x16   :  { %s412_s19 = scalar_lea.hbm %s705_s0, 256 }
  0x17   :  { %p413_p8 = scmp.ne.s32.totalorder %s705_s0, %s412_s19  ;;  %p416_p9 = scmp.lt.u32.totalorder %s412_s19, %s705_s0 }
  0x19   :  { %p418_p10 = pnand %p416_p9, %p413_p8 }
  0x1b   :  { %421 = shalt.err (!%p418_p10)
}
  0x1c   :  { %s422_s24 = scalar_lea.vmem %s580_s27, 256  ;;  %p427_p12 = scmp.lt.s32.totalorder %s580_s27, %s580_s27 }
  0x1d   :  { %p423_p11 = scmp.ne.s32.totalorder %s580_s27, %s422_s24  ;;  %p428_p13 = scmp.lt.s32.totalorder %s422_s24, %s422_s24 }
  0x1f   :  { %p429_p0 = por %p428_p13, %p427_p12 }
  0x21   :  { %p430_p1 = pnand %p429_p0, %p423_p11 }
  0x23   :  { %433 = shalt.err (!%p430_p1)
}
  0x24   :  { %29 = dma.hbm_to_vmem [thread:$0]  %s705_s0, 256, %s580_s27, [#allocation3], %s534_s13, %s534_s13, %s535_s14  }
  0x25   :  { %s536_s26 = smov [#allocation7]   ;;  %s537_s29 = smov [#allocation8]  }
  0x26   :  { %s47_s28 = sshll.u32 %s536_s26, 4  ;;  %s61_s30 = sshll.u32 %s537_s29, 4  ;;  %s48_s28 = int_to_ptr.vmem [resolvable:$true] %s47_s28  ;;  %s617_s30 = int_to_ptr.vmem [resolvable:$true] %s61_s30 }
  0x27   :  { %s434_s10 = scalar_lea.hbm %s707_s2, 512 }
  0x28   :  { %p435_p2 = scmp.ne.s32.totalorder %s707_s2, %s434_s10  ;;  %p438_p3 = scmp.lt.u32.totalorder %s434_s10, %s707_s2 }
  0x2a   :  { %p440_p4 = pnand %p438_p3, %p435_p2 }
  0x2c   :  { %443 = shalt.err (!%p440_p4)
}
  0x2d   :  { %s444_s0 = scalar_lea.vmem %s48_s28, 512  ;;  %p449_p6 = scmp.lt.s32.totalorder %s48_s28, %s48_s28 }
  0x2e   :  { %p445_p5 = scmp.ne.s32.totalorder %s48_s28, %s444_s0  ;;  %p450_p7 = scmp.lt.s32.totalorder %s444_s0, %s444_s0 }
  0x30   :  { %p451_p8 = por %p450_p7, %p449_p6 }
  0x32   :  { %p452_p9 = pnand %p451_p8, %p445_p5 }
  0x34   :  { %455 = shalt.err (!%p452_p9)
}
  0x35   :  { %53 = dma.hbm_to_vmem [thread:$0]  %s707_s2, 512, %s48_s28, [#allocation6], %s534_s13, %s534_s13, %s535_s14  }
  0x36   :  { %s456_s20 = scalar_lea.hbm %s709_s4, 512 }
  0x37   :  { %p457_p10 = scmp.ne.s32.totalorder %s709_s4, %s456_s20  ;;  %p460_p11 = scmp.lt.u32.totalorder %s456_s20, %s709_s4 }
  0x39   :  { %p462_p12 = pnand %p460_p11, %p457_p10 }
  0x3b   :  { %465 = shalt.err (!%p462_p12)
}
  0x3c   :  { %s466_s1 = scalar_lea.vmem %s617_s30, 512  ;;  %p471_p0 = scmp.lt.s32.totalorder %s617_s30, %s617_s30 }
  0x3d   :  { %p467_p13 = scmp.ne.s32.totalorder %s617_s30, %s466_s1  ;;  %p472_p1 = scmp.lt.s32.totalorder %s466_s1, %s466_s1 }
  0x3f   :  { %p473_p2 = por %p472_p1, %p471_p0 }
  0x41   :  { %p474_p3 = pnand %p473_p2, %p467_p13 }
  0x43   :  { %477 = shalt.err (!%p474_p3)
}
  0x44   :  { %67 = dma.hbm_to_vmem [thread:$0]  %s709_s4, 512, %s617_s30, [#allocation9], %s534_s13, %s534_s13, %s535_s14  }
  0x45   :  { %522 = dma.done.wait [#allocation3], 256  }
  0x46   :  { %523 = vsyncadd [#allocation3], 4294967040 }
  0x47   :  { %524 = dma.done.wait [#allocation6], 768  }
  0x48   :  { %525 = vsyncadd [#allocation6], 4294966528 }
  0x49   :  { %526 = dma.done.wait [#allocation9], 512  }
  0x4a   :  { %527 = vsyncadd [#allocation9], 4294966784  ;;  %v84_v0 = vld [vmem:[#allocation7] sm:$0xff]  ;;  %v85_v1 = vld [vmem:[#allocation7 + $0x8] sm:$0xff]  ;;  %vm95_vm0 = vcmask 261120   ;;  %s539_s8 = smov [#allocation11]  }
  0x4b   :  { %v183_v2 = vld [vmem:[#allocation8] sm:$0xff]  ;;  %v358_v3 = vpack.c.bf16 %v85_v1, %v84_v0  ;;  %v184_v4 = vld [vmem:[#allocation8 + $0x8] sm:$0xff]  ;;  %v86_v5 = vld [vmem:[#allocation7 + $0x10] sm:$0xff] }
  0x4c   :  { %v87_v6 = vld [vmem:[#allocation7 + $0x18] sm:$0xff]  ;;  %v366_v7 = vpack.c.bf16 %v184_v4, %v183_v2  ;;  %v185_v9 = vld [vmem:[#allocation8 + $0x10] sm:$0xff]  ;;  %v82_v11 = vld [vmem:[#allocation2] sm:$0xff] }
  0x4d   :  { %v362_v8 = vpack.c.bf16 %v87_v6, %v86_v5  ;;  %v186_v10 = vld [vmem:[#allocation8 + $0x18] sm:$0xff]  ;;  %359 = vmatprep.subr.bf16.mxu0 %v358_v3  ;;  %344 = vmatprep.mubr.msk.f32.mxu0 %vm95_vm0, %v82_v11  ;;  %v181_v13 = vld [vmem:[#allocation5] sm:$0xff]  ;;  %v83_v14 = vld [vmem:[#allocation2 + $0x8] sm:$0xff] }
  0x4e   :  { %v370_v12 = vpack.c.bf16 %v186_v10, %v185_v9  ;;  %367 = vmatprep.subr.bf16.mxu1 %v366_v7  ;;  %361 = vmatpush3.bf16.msra.mxu0 %v358_v3  ;;  %v182_v15 = vld [vmem:[#allocation5 + $0x8] sm:$0xff]  ;;  %v318_v16 = vld [vmem:[%s708_s3] ss:$0 sm:$0xff]  ;;  %s538_s3 = smov [#allocation10]  }
  0x4f   :  { %369 = vmatpush3.bf16.msra.mxu1 %v366_v7  ;;  %363 = vmatprep.subr.bf16.mxu0 %v362_v8  ;;  %v321_v17 = vld [vmem:[%s710_s5] ss:$0 sm:$0xff]  ;;  %s288_s30 = sshll.u32 %s538_s3, 4  ;;  %s300_s5 = sshll.u32 %s539_s8, 4  ;;  %s289_s30 = int_to_ptr.vmem [resolvable:$true] %s288_s30  ;;  %s666_s5 = int_to_ptr.vmem [resolvable:$true] %s300_s5 }
  0x50   :  { %371 = vmatprep.subr.bf16.mxu1 %v370_v12  ;;  %355 = vmatprep.mubr.msk.f32.mxu1 %vm95_vm0, %v181_v13  ;;  %s478_s9 = scalar_lea.vmem %s289_s30, 256  ;;  %p483_p5 = scmp.lt.s32.totalorder %s289_s30, %s289_s30 }
  0x51   :  { %p479_p4 = scmp.ne.s32.totalorder %s289_s30, %s478_s9  ;;  %p484_p6 = scmp.lt.s32.totalorder %s478_s9, %s478_s9 }
  0x52   :  { %365 = vmatpush3.bf16.msra.mxu0 %v362_v8 }
  0x53   :  { %373 = vmatpush3.bf16.msra.mxu1 %v370_v12  ;;  %p485_p7 = por %p484_p6, %p483_p5 }
  0x55   :  { %345 = vmatmul.mubr.msk.f32.vlgmr.msra.gmra.mrb[0].mxu0 %vm95_vm0, %v83_v14  ;;  %p486_p8 = pnand %p485_p7, %p479_p4 }
  0x56   :  { %356 = vmatmul.mubr.msk.f32.vlgmr.msra.gmra.mrb[0].mxu1 %vm95_vm0, %v182_v15 }
 0x128   :  { %v346_v18 = vpop.f32.mrb[0].mxu0 }
 0x129   :  { %v174_v19 = vadd.f32 %v346_v18, %v318_v16  ;;  %v357_v20 = vpop.f32.mrb[0].mxu1  ;;  %v168_v21 = vpop.f32.mrb[1].mxu0 }
 0x12a   :  { %v272_v22 = vadd.f32 %v357_v20, %v321_v17  ;;  %v169_v23 = vadd.f32 %v318_v16, %v168_v21  ;;  %v266_v24 = vpop.f32.mrb[1].mxu1 }
 0x12b   :  { %v178_v25 = vmul.f32 3.0, %v174_v19  ;;  %v267_v26 = vadd.f32 %v321_v17, %v266_v24 }
 0x12c   :  { %v276_v27 = vmul.f32 3.0, %v272_v22  ;;  %v177_v28 = vmul.f32 3.0, %v169_v23 }
 0x12d   :  { %382 = vtanh.f32 %v178_v25  ;;  %v275_v29 = vmul.f32 3.0, %v267_v26 }
 0x12e   :  { %384 = vtanh.f32 %v276_v27 }
 0x12f   :  { %386 = vtanh.f32 %v177_v28 }
 0x130   :  { %388 = vtanh.f32 %v275_v29 }
 0x137   :  { %v383_v30 = vpop.eup %382 }
 0x138   :  { %v385_v31 = vpop.eup %384  ;;  %280 = vst.msk [vmem:[#allocation10 + $0x8] sm:$0xff] %vm95_vm0, %v383_v30 }
 0x139   :  { %v387_v32 = vpop.eup %386  ;;  %282 = vst.msk [vmem:[#allocation11 + $0x8] sm:$0xff] %vm95_vm0, %v385_v31 }
 0x13a   :  { %v389_v33 = vpop.eup %388  ;;  %279 = vst.msk [vmem:[#allocation10] sm:$0xff] %vm95_vm0, %v387_v32 }
 0x13b   :  { %281 = vst.msk [vmem:[#allocation11] sm:$0xff] %vm95_vm0, %v389_v33 }
 0x13c   :  { %489 = shalt.err (!%p486_p8)
}
 0x13d   :  { %s490_s12 = scalar_lea.hbm %s711_s6, 256 }
 0x13e   :  { %p491_p9 = scmp.ne.s32.totalorder %s711_s6, %s490_s12  ;;  %p494_p10 = scmp.lt.u32.totalorder %s490_s12, %s711_s6 }
 0x140   :  { %p496_p11 = pnand %p494_p10, %p491_p9 }
 0x142   :  { %499 = shalt.err (!%p496_p11)
}
 0x143   :  { %294 = dma.vmem_to_hbm [thread:$0]  %s289_s30, 256, %s711_s6, [#allocation4], %s534_s13, %s534_s13, %s535_s14  }
 0x144   :  { %s500_s19 = scalar_lea.vmem %s666_s5, 256  ;;  %p505_p13 = scmp.lt.s32.totalorder %s666_s5, %s666_s5 }
 0x145   :  { %p501_p12 = scmp.ne.s32.totalorder %s666_s5, %s500_s19  ;;  %p506_p0 = scmp.lt.s32.totalorder %s500_s19, %s500_s19 }
 0x147   :  { %p507_p1 = por %p506_p0, %p505_p13 }
 0x149   :  { %p508_p2 = pnand %p507_p1, %p501_p12 }
 0x14b   :  { %511 = shalt.err (!%p508_p2)
}
 0x14c   :  { %s512_s22 = scalar_lea.hbm %s712_s7, 256 }
 0x14d   :  { %p513_p3 = scmp.ne.s32.totalorder %s712_s7, %s512_s22  ;;  %p516_p4 = scmp.lt.u32.totalorder %s512_s22, %s712_s7 }
 0x14f   :  { %p518_p5 = pnand %p516_p4, %p513_p3 }
 0x151   :  { %521 = shalt.err (!%p518_p5)
}
 0x152   :  { %306 = dma.vmem_to_hbm [thread:$0]  %s666_s5, 256, %s712_s7, [#allocation12], %s534_s13, %s534_s13, %s535_s14  }
 0x153   :  { %528 = dma.done.wait [#allocation4], 256  }
 0x154   :  { %529 = vsyncadd [#allocation4], 4294967040 }
 0x155   :  { %530 = dma.done.wait [#allocation12], 256  }
 0x156   :  { %531 = vsyncadd [#allocation12], 4294967040 }
 0x157   :  { %313 = vsyncpa [#allocation3], 1 }
 0x158   :  { %314 = vsyncpa [#allocation6], 1 }
 0x159   :  { %315 = vsyncpa [#allocation9], 1 }
 0x15a   :  { %316 = vsyncpa [#allocation4], 1 }
 0x15b   :  { %317 = vsyncpa [#allocation12], 1 }

</bundles_post_ra>
